<compile_context>
chip_gen: v7x
topology: tpu7x:2x2x1
jax: 0.10.0
libtpu: 0.0.40
codegen_flags: <defaults>
</compile_context>

<pallas_src>
import jax
import jax.numpy as jnp
from jax.experimental import pallas as pl
from jax.experimental.pallas import tpu as pltpu


def _fused_interior_kernel(w1_ref, b1_ref, w2_ref, b2_ref, x_ref, o_ref):
    """conv1(1x1) + SiLU -> conv2(1x1) + SiLU on the interior H*W pixels.

    w1_ref, w2_ref : (C, C) f32 SMEM   (torch layout: [out, in])
    b1_ref, b2_ref : (C,)   f32 SMEM
    x_ref          : (1, C, H*W) f32 VMEM   (spatial flattened -> lane-dense)
    o_ref          : (1, C, H*W) f32 VMEM
    """
    C = x_ref.shape[1]

    # Load the C lane-dense input rows once.
    xs = [x_ref[0, c, :] for c in range(C)]

    # ---- stage 1: conv1 (1x1) + SiLU, kept entirely in vregs (no scratch) ----
    t1 = []
    for co in range(C):
        a = xs[0] * w1_ref[co, 0]
        for ci in range(1, C):
            a = a + xs[ci] * w1_ref[co, ci]
        a = a + b1_ref[co]
        t1.append(a * jax.nn.sigmoid(a))

    # ---- stage 2: conv2 (1x1) + SiLU, one unmasked lane-dense store per co ----
    for co in range(C):
        a = t1[0] * w2_ref[co, 0]
        for ci in range(1, C):
            a = a + t1[ci] * w2_ref[co, ci]
        a = a + b2_ref[co]
        o_ref[0, co, :] = a * jax.nn.sigmoid(a)


def model_forward(x_nchw, params):
    """Fused conv1+SiLU+conv2+SiLU (1x1 kernels, padding=1 each), NCHW in f32."""
    w1, b1, w2, b2 = params
    N, C, H, W = x_nchw.shape
    Ho, Wo = H + 4, W + 4
    HW = H * W

    # Layout plumbing only: flatten spatial so the lane axis is H*W (256 here,
    # a multiple of 128) -> full-width loads/stores inside the kernel.
    x_flat = x_nchw.reshape(N, C, HW)

    smem = pl.BlockSpec(memory_space=pltpu.MemorySpace.SMEM)
    interior = pl.pallas_call(
        _fused_interior_kernel,
        out_shape=jax.ShapeDtypeStruct((N, C, HW), jnp.float32),
        grid=(N,),
        in_specs=[
            smem,                                            # w1 (C, C)
            smem,                                            # b1 (C,)
            smem,                                            # w2 (C, C)
            smem,                                            # b2 (C,)
            pl.BlockSpec((1, C, HW), lambda n: (n, 0, 0)),   # x
        ],
        out_specs=pl.BlockSpec((1, C, HW), lambda n: (n, 0, 0)),
        compiler_params=pltpu.CompilerParams(
            dimension_semantics=("parallel",)),
    )(w1, b1, w2, b2, x_flat)
    interior = interior.reshape(N, C, H, W)

    # Constant padding rings (weight/bias-only, f32, same op order as reference):
    #   outer ring  = silu(b2)                       (conv2's zero padding)
    #   second ring = silu(w2 @ silu(b1) + b2)       (conv1's zero padding -> SiLU -> conv2 -> SiLU)
    s1 = b1 * jax.nn.sigmoid(b1)
    r2 = w2 @ s1 + b2
    ring_inner = r2 * jax.nn.sigmoid(r2)
    ring_outer = b2 * jax.nn.sigmoid(b2)

    out = jnp.broadcast_to(ring_outer[None, :, None, None], (N, C, Ho, Wo))
    out = out.at[:, :, 1:-1, 1:-1].set(
        jnp.broadcast_to(ring_inner[None, :, None, None], (N, C, Ho - 2, Wo - 2)))
    out = out.at[:, :, 2:-2, 2:-2].set(interior)
    return out


def _reference(x_nchw, params):
    # Pure-JAX reference for sanity checking.
    w1, b1, w2, b2 = params

    def conv_silu(x, w, b):
        xp = jnp.pad(x, ((0, 0), (0, 0), (1, 1), (1, 1)))
        v = jnp.einsum("nchw,oc->nohw", xp, w) + b[None, :, None, None]
        return v * jax.nn.sigmoid(v)

    return conv_silu(conv_silu(x_nchw, w1, b1), w2, b2)


if __name__ == "__main__":
    key = jax.random.PRNGKey(0)
    k1, k2, k3, k4, kx = jax.random.split(key, 5)

    # Deterministic init mimicking torch Conv2d default (uniform +-1/sqrt(fan_in)).
    bound = 1.0 / jnp.sqrt(3.0)
    w1 = jax.random.uniform(k1, (3, 3), minval=-bound, maxval=bound, dtype=jnp.float32)
    b1 = jax.random.uniform(k2, (3,), minval=-bound, maxval=bound, dtype=jnp.float32)
    w2 = jax.random.uniform(k3, (3, 3), minval=-bound, maxval=bound, dtype=jnp.float32)
    b2 = jax.random.uniform(k4, (3,), minval=-bound, maxval=bound, dtype=jnp.float32)
    params = (w1, b1, w2, b2)

    # Small input consistent with the module (C must be 3).
    x = jax.random.normal(kx, (2, 3, 16, 16), dtype=jnp.float32)

    fwd = jax.jit(model_forward)
    out = jax.block_until_ready(fwd(x, params))
    assert out.shape == (2, 3, 20, 20), out.shape

    ref = jax.block_until_ready(_reference(x, params))
    assert jnp.allclose(out, ref, atol=1e-5, rtol=1e-5), float(jnp.max(jnp.abs(out - ref)))

    print("KERNEL_OK")
</pallas_src>

<mosaic_0001>
module attributes {stable_mosaic.version = 11 : i64} {
  func.func @_fused_interior_kernel(%arg0: i32, %arg1: memref<3x3xf32, #tpu.memory_space<smem>>, %arg2: memref<3xf32, #tpu.memory_space<smem>>, %arg3: memref<3x3xf32, #tpu.memory_space<smem>>, %arg4: memref<3xf32, #tpu.memory_space<smem>>, %arg5: memref<1x3x256xf32, #tpu.memory_space<vmem>>, %arg6: memref<1x3x256xf32, #tpu.memory_space<vmem>>) attributes {dimension_semantics = [#tpu.dimension_semantics<parallel>], iteration_bounds = array<i64: 2>, scalar_prefetch = 0 : i64, scratch_operands = 0 : i64, tpu.core_type = #tpu.core_type<tc>, window_params = [{transform_indices = @transform_0, window_bounds = array<i64: 3, 3>}, {transform_indices = @transform_1, window_bounds = array<i64: 3>}, {transform_indices = @transform_2, window_bounds = array<i64: 3, 3>}, {transform_indices = @transform_3, window_bounds = array<i64: 3>}, {transform_indices = @transform_4, window_bounds = array<i64: 1, 3, 256>}, {transform_indices = @transform_5, window_bounds = array<i64: 1, 3, 256>}]} {
    %c0 = arith.constant 0 : index
    %c0_0 = arith.constant 0 : index
    %c0_1 = arith.constant 0 : index
    %0 = vector.load %arg5[%c0, %c0_0, %c0_1] : memref<1x3x256xf32, #tpu.memory_space<vmem>>, vector<1x1x256xf32>
    %1 = vector.shape_cast %0 : vector<1x1x256xf32> to vector<256xf32>
    %c0_2 = arith.constant 0 : index
    %c1 = arith.constant 1 : index
    %c0_3 = arith.constant 0 : index
    %2 = vector.load %arg5[%c0_2, %c1, %c0_3] : memref<1x3x256xf32, #tpu.memory_space<vmem>>, vector<1x1x256xf32>
    %3 = vector.shape_cast %2 : vector<1x1x256xf32> to vector<256xf32>
    %c0_4 = arith.constant 0 : index
    %c2 = arith.constant 2 : index
    %c0_5 = arith.constant 0 : index
    %4 = vector.load %arg5[%c0_4, %c2, %c0_5] : memref<1x3x256xf32, #tpu.memory_space<vmem>>, vector<1x1x256xf32>
    %5 = vector.shape_cast %4 : vector<1x1x256xf32> to vector<256xf32>
    %c0_6 = arith.constant 0 : index
    %c0_7 = arith.constant 0 : index
    %6 = memref.load %arg1[%c0_6, %c0_7] : memref<3x3xf32, #tpu.memory_space<smem>>
    %7 = vector.broadcast %6 : f32 to vector<256xf32>
    %8 = arith.mulf %1, %7 : vector<256xf32>
    %c0_8 = arith.constant 0 : index
    %c1_9 = arith.constant 1 : index
    %9 = memref.load %arg1[%c0_8, %c1_9] : memref<3x3xf32, #tpu.memory_space<smem>>
    %10 = vector.broadcast %9 : f32 to vector<256xf32>
    %11 = arith.mulf %3, %10 : vector<256xf32>
    %12 = arith.addf %8, %11 : vector<256xf32>
    %c0_10 = arith.constant 0 : index
    %c2_11 = arith.constant 2 : index
    %13 = memref.load %arg1[%c0_10, %c2_11] : memref<3x3xf32, #tpu.memory_space<smem>>
    %14 = vector.broadcast %13 : f32 to vector<256xf32>
    %15 = arith.mulf %5, %14 : vector<256xf32>
    %16 = arith.addf %12, %15 : vector<256xf32>
    %c0_12 = arith.constant 0 : index
    %17 = memref.load %arg2[%c0_12] : memref<3xf32, #tpu.memory_space<smem>>
    %18 = vector.broadcast %17 : f32 to vector<256xf32>
    %19 = arith.addf %16, %18 : vector<256xf32>
    %20 = arith.negf %19 : vector<256xf32>
    %21 = math.exp %20 : vector<256xf32>
    %cst = arith.constant 1.000000e+00 : f32
    %22 = vector.broadcast %cst : f32 to vector<256xf32>
    %23 = arith.addf %22, %21 : vector<256xf32>
    %24 = arith.divf %22, %23 : vector<256xf32>
    %25 = arith.mulf %19, %24 : vector<256xf32>
    %c1_13 = arith.constant 1 : index
    %c0_14 = arith.constant 0 : index
    %26 = memref.load %arg1[%c1_13, %c0_14] : memref<3x3xf32, #tpu.memory_space<smem>>
    %27 = vector.broadcast %26 : f32 to vector<256xf32>
    %28 = arith.mulf %1, %27 : vector<256xf32>
    %c1_15 = arith.constant 1 : index
    %c1_16 = arith.constant 1 : index
    %29 = memref.load %arg1[%c1_15, %c1_16] : memref<3x3xf32, #tpu.memory_space<smem>>
    %30 = vector.broadcast %29 : f32 to vector<256xf32>
    %31 = arith.mulf %3, %30 : vector<256xf32>
    %32 = arith.addf %28, %31 : vector<256xf32>
    %c1_17 = arith.constant 1 : index
    %c2_18 = arith.constant 2 : index
    %33 = memref.load %arg1[%c1_17, %c2_18] : memref<3x3xf32, #tpu.memory_space<smem>>
    %34 = vector.broadcast %33 : f32 to vector<256xf32>
    %35 = arith.mulf %5, %34 : vector<256xf32>
    %36 = arith.addf %32, %35 : vector<256xf32>
    %c1_19 = arith.constant 1 : index
    %37 = memref.load %arg2[%c1_19] : memref<3xf32, #tpu.memory_space<smem>>
    %38 = vector.broadcast %37 : f32 to vector<256xf32>
    %39 = arith.addf %36, %38 : vector<256xf32>
    %40 = arith.negf %39 : vector<256xf32>
    %41 = math.exp %40 : vector<256xf32>
    %cst_20 = arith.constant 1.000000e+00 : f32
    %42 = vector.broadcast %cst_20 : f32 to vector<256xf32>
    %43 = arith.addf %42, %41 : vector<256xf32>
    %44 = arith.divf %42, %43 : vector<256xf32>
    %45 = arith.mulf %39, %44 : vector<256xf32>
    %c2_21 = arith.constant 2 : index
    %c0_22 = arith.constant 0 : index
    %46 = memref.load %arg1[%c2_21, %c0_22] : memref<3x3xf32, #tpu.memory_space<smem>>
    %47 = vector.broadcast %46 : f32 to vector<256xf32>
    %48 = arith.mulf %1, %47 : vector<256xf32>
    %c2_23 = arith.constant 2 : index
    %c1_24 = arith.constant 1 : index
    %49 = memref.load %arg1[%c2_23, %c1_24] : memref<3x3xf32, #tpu.memory_space<smem>>
    %50 = vector.broadcast %49 : f32 to vector<256xf32>
    %51 = arith.mulf %3, %50 : vector<256xf32>
    %52 = arith.addf %48, %51 : vector<256xf32>
    %c2_25 = arith.constant 2 : index
    %c2_26 = arith.constant 2 : index
    %53 = memref.load %arg1[%c2_25, %c2_26] : memref<3x3xf32, #tpu.memory_space<smem>>
    %54 = vector.broadcast %53 : f32 to vector<256xf32>
    %55 = arith.mulf %5, %54 : vector<256xf32>
    %56 = arith.addf %52, %55 : vector<256xf32>
    %c2_27 = arith.constant 2 : index
    %57 = memref.load %arg2[%c2_27] : memref<3xf32, #tpu.memory_space<smem>>
    %58 = vector.broadcast %57 : f32 to vector<256xf32>
    %59 = arith.addf %56, %58 : vector<256xf32>
    %60 = arith.negf %59 : vector<256xf32>
    %61 = math.exp %60 : vector<256xf32>
    %cst_28 = arith.constant 1.000000e+00 : f32
    %62 = vector.broadcast %cst_28 : f32 to vector<256xf32>
    %63 = arith.addf %62, %61 : vector<256xf32>
    %64 = arith.divf %62, %63 : vector<256xf32>
    %65 = arith.mulf %59, %64 : vector<256xf32>
    %c0_29 = arith.constant 0 : index
    %c0_30 = arith.constant 0 : index
    %66 = memref.load %arg3[%c0_29, %c0_30] : memref<3x3xf32, #tpu.memory_space<smem>>
    %67 = vector.broadcast %66 : f32 to vector<256xf32>
    %68 = arith.mulf %25, %67 : vector<256xf32>
    %c0_31 = arith.constant 0 : index
    %c1_32 = arith.constant 1 : index
    %69 = memref.load %arg3[%c0_31, %c1_32] : memref<3x3xf32, #tpu.memory_space<smem>>
    %70 = vector.broadcast %69 : f32 to vector<256xf32>
    %71 = arith.mulf %45, %70 : vector<256xf32>
    %72 = arith.addf %68, %71 : vector<256xf32>
    %c0_33 = arith.constant 0 : index
    %c2_34 = arith.constant 2 : index
    %73 = memref.load %arg3[%c0_33, %c2_34] : memref<3x3xf32, #tpu.memory_space<smem>>
    %74 = vector.broadcast %73 : f32 to vector<256xf32>
    %75 = arith.mulf %65, %74 : vector<256xf32>
    %76 = arith.addf %72, %75 : vector<256xf32>
    %c0_35 = arith.constant 0 : index
    %77 = memref.load %arg4[%c0_35] : memref<3xf32, #tpu.memory_space<smem>>
    %78 = vector.broadcast %77 : f32 to vector<256xf32>
    %79 = arith.addf %76, %78 : vector<256xf32>
    %80 = arith.negf %79 : vector<256xf32>
    %81 = math.exp %80 : vector<256xf32>
    %cst_36 = arith.constant 1.000000e+00 : f32
    %82 = vector.broadcast %cst_36 : f32 to vector<256xf32>
    %83 = arith.addf %82, %81 : vector<256xf32>
    %84 = arith.divf %82, %83 : vector<256xf32>
    %85 = arith.mulf %79, %84 : vector<256xf32>
    %c0_37 = arith.constant 0 : index
    %c0_38 = arith.constant 0 : index
    %c0_39 = arith.constant 0 : index
    %86 = vector.load %arg6[%c0_37, %c0_38, %c0_39] : memref<1x3x256xf32, #tpu.memory_space<vmem>>, vector<1x1x256xf32>
    %87 = vector.shape_cast %86 : vector<1x1x256xf32> to vector<256xf32>
    %88 = vector.shape_cast %85 : vector<256xf32> to vector<1x1x256xf32>
    tpu.vector_store %arg6[%c0_37, %c0_38, %c0_39], %88 {strides = array<i32>} : memref<1x3x256xf32, #tpu.memory_space<vmem>>, vector<1x1x256xf32>,
    %c1_40 = arith.constant 1 : index
    %c0_41 = arith.constant 0 : index
    %89 = memref.load %arg3[%c1_40, %c0_41] : memref<3x3xf32, #tpu.memory_space<smem>>
    %90 = vector.broadcast %89 : f32 to vector<256xf32>
    %91 = arith.mulf %25, %90 : vector<256xf32>
    %c1_42 = arith.constant 1 : index
    %c1_43 = arith.constant 1 : index
    %92 = memref.load %arg3[%c1_42, %c1_43] : memref<3x3xf32, #tpu.memory_space<smem>>
    %93 = vector.broadcast %92 : f32 to vector<256xf32>
    %94 = arith.mulf %45, %93 : vector<256xf32>
    %95 = arith.addf %91, %94 : vector<256xf32>
    %c1_44 = arith.constant 1 : index
    %c2_45 = arith.constant 2 : index
    %96 = memref.load %arg3[%c1_44, %c2_45] : memref<3x3xf32, #tpu.memory_space<smem>>
    %97 = vector.broadcast %96 : f32 to vector<256xf32>
    %98 = arith.mulf %65, %97 : vector<256xf32>
    %99 = arith.addf %95, %98 : vector<256xf32>
    %c1_46 = arith.constant 1 : index
    %100 = memref.load %arg4[%c1_46] : memref<3xf32, #tpu.memory_space<smem>>
    %101 = vector.broadcast %100 : f32 to vector<256xf32>
    %102 = arith.addf %99, %101 : vector<256xf32>
    %103 = arith.negf %102 : vector<256xf32>
    %104 = math.exp %103 : vector<256xf32>
    %cst_47 = arith.constant 1.000000e+00 : f32
    %105 = vector.broadcast %cst_47 : f32 to vector<256xf32>
    %106 = arith.addf %105, %104 : vector<256xf32>
    %107 = arith.divf %105, %106 : vector<256xf32>
    %108 = arith.mulf %102, %107 : vector<256xf32>
    %c0_48 = arith.constant 0 : index
    %c1_49 = arith.constant 1 : index
    %c0_50 = arith.constant 0 : index
    %109 = vector.load %arg6[%c0_48, %c1_49, %c0_50] : memref<1x3x256xf32, #tpu.memory_space<vmem>>, vector<1x1x256xf32>
    %110 = vector.shape_cast %109 : vector<1x1x256xf32> to vector<256xf32>
    %111 = vector.shape_cast %108 : vector<256xf32> to vector<1x1x256xf32>
    tpu.vector_store %arg6[%c0_48, %c1_49, %c0_50], %111 {strides = array<i32>} : memref<1x3x256xf32, #tpu.memory_space<vmem>>, vector<1x1x256xf32>,
    %c2_51 = arith.constant 2 : index
    %c0_52 = arith.constant 0 : index
    %112 = memref.load %arg3[%c2_51, %c0_52] : memref<3x3xf32, #tpu.memory_space<smem>>
    %113 = vector.broadcast %112 : f32 to vector<256xf32>
    %114 = arith.mulf %25, %113 : vector<256xf32>
    %c2_53 = arith.constant 2 : index
    %c1_54 = arith.constant 1 : index
    %115 = memref.load %arg3[%c2_53, %c1_54] : memref<3x3xf32, #tpu.memory_space<smem>>
    %116 = vector.broadcast %115 : f32 to vector<256xf32>
    %117 = arith.mulf %45, %116 : vector<256xf32>
    %118 = arith.addf %114, %117 : vector<256xf32>
    %c2_55 = arith.constant 2 : index
    %c2_56 = arith.constant 2 : index
    %119 = memref.load %arg3[%c2_55, %c2_56] : memref<3x3xf32, #tpu.memory_space<smem>>
    %120 = vector.broadcast %119 : f32 to vector<256xf32>
    %121 = arith.mulf %65, %120 : vector<256xf32>
    %122 = arith.addf %118, %121 : vector<256xf32>
    %c2_57 = arith.constant 2 : index
    %123 = memref.load %arg4[%c2_57] : memref<3xf32, #tpu.memory_space<smem>>
    %124 = vector.broadcast %123 : f32 to vector<256xf32>
    %125 = arith.addf %122, %124 : vector<256xf32>
    %126 = arith.negf %125 : vector<256xf32>
    %127 = math.exp %126 : vector<256xf32>
    %cst_58 = arith.constant 1.000000e+00 : f32
    %128 = vector.broadcast %cst_58 : f32 to vector<256xf32>
    %129 = arith.addf %128, %127 : vector<256xf32>
    %130 = arith.divf %128, %129 : vector<256xf32>
    %131 = arith.mulf %125, %130 : vector<256xf32>
    %c0_59 = arith.constant 0 : index
    %c2_60 = arith.constant 2 : index
    %c0_61 = arith.constant 0 : index
    %132 = vector.load %arg6[%c0_59, %c2_60, %c0_61] : memref<1x3x256xf32, #tpu.memory_space<vmem>>, vector<1x1x256xf32>
    %133 = vector.shape_cast %132 : vector<1x1x256xf32> to vector<256xf32>
    %134 = vector.shape_cast %131 : vector<256xf32> to vector<1x1x256xf32>
    tpu.vector_store %arg6[%c0_59, %c2_60, %c0_61], %134 {strides = array<i32>} : memref<1x3x256xf32, #tpu.memory_space<vmem>>, vector<1x1x256xf32>,
    return
  }
  func.func @transform_0(%arg0: i32) -> (i32, i32) {
    %c0_i32 = arith.constant 0 : i32
    %c0_i32_0 = arith.constant 0 : i32
    %c0_i32_1 = arith.constant 0 : i32
    return %c0_i32, %c0_i32_0 : i32, i32
  }
  func.func @transform_1(%arg0: i32) -> i32 {
    %c0_i32 = arith.constant 0 : i32
    %c0_i32_0 = arith.constant 0 : i32
    return %c0_i32 : i32
  }
  func.func @transform_2(%arg0: i32) -> (i32, i32) {
    %c0_i32 = arith.constant 0 : i32
    %c0_i32_0 = arith.constant 0 : i32
    %c0_i32_1 = arith.constant 0 : i32
    return %c0_i32, %c0_i32_0 : i32, i32
  }
  func.func @transform_3(%arg0: i32) -> i32 {
    %c0_i32 = arith.constant 0 : i32
    %c0_i32_0 = arith.constant 0 : i32
    return %c0_i32 : i32
  }
  func.func @transform_4(%arg0: i32) -> (i32, i32, i32) {
    %c0_i32 = arith.constant 0 : i32
    %c0_i32_0 = arith.constant 0 : i32
    %c0_i32_1 = arith.constant 0 : i32
    return %arg0, %c0_i32, %c0_i32_0 : i32, i32, i32
  }
  func.func @transform_5(%arg0: i32) -> (i32, i32, i32) {
    %c0_i32 = arith.constant 0 : i32
    %c0_i32_0 = arith.constant 0 : i32
    %c0_i32_1 = arith.constant 0 : i32
    return %arg0, %c0_i32, %c0_i32_0 : i32, i32, i32
  }
}

</mosaic_0001>

<bundles_post_ra>
// kernel: model_forward.1
= control target key start
LH: loop header
LB: loop body
LE: loop exit
PB: predicated region body
PF: predicated region fallthrough
CT: control target
= control target key end

     0   :  { %10 = vsyncpa [#allocation3], 0  ;;  %s864_s0 = inlined_call_operand.vmem [shape: f32[3,3], index: 0, kind: input, shape index: {}]   ;;  %s865_s1 = inlined_call_operand.vmem [shape: f32[3], index: 1, kind: input, shape index: {}]   ;;  %s866_s2 = inlined_call_operand.vmem [shape: f32[3,3], index: 2, kind: input, shape index: {}]   ;;  %s867_s3 = inlined_call_operand.vmem [shape: f32[3], index: 3, kind: input, shape index: {}]   ;;  %s868_s4 = inlined_call_operand.vmem [shape: f32[2,3,256], index: 4, kind: input, shape index: {}]   ;;  %s869_s5 = inlined_call_operand.vmem [shape: f32[2,3,256], index: 5, kind: output, shape index: {}]  }
   0x1   :  { %11 = vsyncpa [#allocation5], 0 }
   0x2   :  { %12 = vsyncpa [#allocation8], 0  ;;  %s751_s18 = smov 0  }
   0x3 LB: > { %s183_s21 = sshll.u32 %s865_s1, 4  ;;  %s760_s22 = sadd.s32 4294967295, %s715_s18   ;;  %s715_s18 = sphi %s751_s18, %s18_s18   ;;  %s184_s21 = int_to_ptr.vmem [resolvable:$true] %s183_s21 }
   0x4   : > { %p515_p0 = scmp.ge.s32.totalorder %s715_s18, 1  ;;  %p159_p1 = scmp.lt.s32.totalorder %s715_s18, 3 }
   0x5   : > { %p593_p2 = scmp.eq.s32.totalorder %s760_s22, 0  ;;  %s172_s26 = sshll.u32 %s864_s0, 4  ;;  %s772_s26 = int_to_ptr.vmem [resolvable:$true] %s172_s26 }
   0x6   : > { %p765_p3 = pnand %p515_p0, %p159_p1  ;;  %s194_s29 = sshll.u32 %s866_s2, 4  ;;  %s779_s29 = int_to_ptr.vmem [resolvable:$true] %s194_s29 }
   0x7   : > { %s205_s8 = sshll.u32 %s867_s3, 4  ;;  %s637_s9 = scalar_lea.vmem %s184_s21, 16  ;;  %s790_s8 = int_to_ptr.vmem [resolvable:$true] %s205_s8 }
   0x8   : > { %p580_p4 = pneg %p765_p3  ;;  %p638_p6 = scmp.ne.s32.totalorder %s184_s21, %s637_s9 }
   0x9   : > { %p645_p10 = scmp.lt.s32.totalorder %s184_s21, %s184_s21  ;;  %p646_p11 = scmp.lt.s32.totalorder %s637_s9, %s637_s9 }
   0xa   : > { %p783_p5 = pnand %p593_p2, %p580_p4 }
   0xb   : > { %p647_p12 = por %p646_p11, %p645_p10 }
   0xc   : > { %p639_p7 = pneg %p783_p5 }
   0xe   : > { %p640_p8 = pnand %p639_p7, %p638_p6 }
  0x10   : > { %p641_p9 = pneg %p640_p8 }
  0x12   : > { %p648_p13 = pnand %p647_p12, %p641_p9 }
  0x14   : > { %651 = shalt.err (!%p648_p13)
}
  0x15   : > { %s717_s10 = smov [#allocation4]   ;;  %s652_s11 = scalar_lea.vmem %s772_s26, 64 }
  0x16   : > { %586 = dma.vmem_to_smem (!%p783_p5), %s184_s21, 16, %s717_s10, [#allocation5]  }
  0x17   : > { %p653_p0 = scmp.ne.s32.totalorder %s772_s26, %s652_s11  ;;  %p660_p6 = scmp.lt.s32.totalorder %s772_s26, %s772_s26 }
  0x18   : > { %p661_p8 = scmp.lt.s32.totalorder %s652_s11, %s652_s11 }
  0x19   : > { %p655_p1 = pnand %p653_p0, %p639_p7 }
  0x1a   : > { %p662_p10 = por %p661_p8, %p660_p6 }
  0x1b   : > { %p656_p4 = pneg %p655_p1 }
  0x1d   : > { %p663_p9 = pnand %p662_p10, %p656_p4 }
  0x1f   : > { %666 = shalt.err (!%p663_p9)
}
  0x20   : > { %s718_s12 = smov [#allocation2]   ;;  %s667_s13 = scalar_lea.vmem %s779_s29, 64 }
  0x21   : > { %583 = dma.vmem_to_smem (!%p783_p5), %s772_s26, 64, %s718_s12, [#allocation3]  }
  0x22   : > { %p668_p11 = scmp.ne.s32.totalorder %s779_s29, %s667_s13  ;;  %p675_p0 = scmp.lt.s32.totalorder %s779_s29, %s779_s29 }
  0x23   : > { %p676_p1 = scmp.lt.s32.totalorder %s667_s13, %s667_s13 }
  0x24   : > { %p670_p12 = pnand %p668_p11, %p639_p7 }
  0x25   : > { %p677_p4 = por %p676_p1, %p675_p0 }
  0x26   : > { %p671_p13 = pneg %p670_p12 }
  0x28   : > { %p678_p6 = pnand %p677_p4, %p671_p13 }
  0x2a   : > { %681 = shalt.err (!%p678_p6)
}
  0x2b   : > { %s719_s14 = smov [#allocation6]   ;;  %s682_s15 = scalar_lea.vmem %s790_s8, 16 }
  0x2c   : > { %589 = dma.vmem_to_smem (!%p783_p5), %s779_s29, 64, %s719_s14, [#allocation5]  }
  0x2d   : > { %p683_p8 = scmp.ne.s32.totalorder %s790_s8, %s682_s15  ;;  %p690_p11 = scmp.lt.s32.totalorder %s790_s8, %s790_s8 }
  0x2e   : > { %p691_p12 = scmp.lt.s32.totalorder %s682_s15, %s682_s15 }
  0x2f   : > { %p685_p10 = pnand %p683_p8, %p639_p7 }
  0x30   : > { %p692_p13 = por %p691_p12, %p690_p11 }
  0x31   : > { %p686_p9 = pneg %p685_p10 }
  0x33   : > { %p693_p0 = pnand %p692_p13, %p686_p9 }
  0x35   : > { %696 = shalt.err (!%p693_p0)
}
  0x36   : > { %s720_s16 = smov [#allocation7]   ;;  %226 = sbr.rel (%p765_p3) target bundleno = 155 (0x9b), region = 40 }
  0x37   : > { %592 = dma.vmem_to_smem (!%p783_p5), %s790_s8, 16, %s720_s16, [#allocation8]  }
  0x3d   : > { %702 = dma.done.wait (%p593_p2), [#allocation3], 64  }
  0x3e   : > { %704 = vsyncadd (%p593_p2), [#allocation3], 4294967232 }
  0x3f   : > { %706 = dma.done.wait (%p593_p2), [#allocation5], 80  }
  0x40   : > { %708 = vsyncadd (%p593_p2), [#allocation5], 4294967216 }
  0x41   : > { %710 = dma.done.wait (%p593_p2), [#allocation8], 16  }
  0x42   : > { %712 = vsyncadd (%p593_p2), [#allocation8], 4294967280 }
  0x43   : > { %244 = sfence }
  0x44   : > { %p267_p3 = scmp.lt.s32.totalorder %s760_s22, 1  ;;  %s282_s17 = sld [smem:[#allocation2]] }
  0x45   : > { %s532_s19 = sld [smem:[#allocation2 + $0x1]]  ;;  %s533_s20 = sld [smem:[#allocation2 + $0x2]] }
  0x46   : > { %s873_s22 = smov (!%p267_p3, %s760_s22), 1  ;;  %s293_s21 = sld [smem:[#allocation4]] }
  0x47   : > { %s535_s23 = sld [smem:[#allocation2 + $0x80]]  ;;  %s562_s24 = sshll.u32 %s873_s22, 3 }
  0x48   : > { %s536_s25 = sld [smem:[#allocation2 + $0x81]]  ;;  %s271_s28 = scalar_lea.vmem %s868_s4, %s562_s24 }
  0x49   : > { %v277_v0 = vld [vmem:[%s271_s28] ss:$4 sm:$0x3]  ;;  %v530_v1 = vld [vmem:[%s271_s28 + $0x1] ss:$4 sm:$0x3]  ;;  %s276_s27 = scalar_lea.vmem %s869_s5, %s562_s24 }
  0x4a   : > { %v283_v2 = vstv %s282_s17  ;;  %v531_v3 = vld [vmem:[%s271_s28 + $0x2] ss:$4 sm:$0x3]  ;;  %s537_s29 = sld [smem:[#allocation2 + $0x82]]  ;;  %s538_s30 = sld [smem:[#allocation4 + $0x1]] }
  0x4b   : > { %v284_v4 = vmul.f32 %v283_v2, %v277_v0  ;;  %v286_v5 = vstv %s532_s19  ;;  %v290_v6 = vstv %s533_s20  ;;  %s540_s6 = sld [smem:[#allocation2 + $0x100]]  ;;  %s541_s7 = sld [smem:[#allocation2 + $0x101]] }
  0x4c   : > { %v287_v7 = vmul.f32 %v530_v1, %v286_v5  ;;  %v291_v8 = vmul.f32 %v531_v3, %v290_v6  ;;  %s542_s8 = sld [smem:[#allocation2 + $0x102]]  ;;  %v294_v13 = vstv %s293_s21  ;;  %s345_s10 = sld [smem:[#allocation6]] }
  0x4d   : > { %v304_v9 = vstv %s535_s23  ;;  %s543_s9 = sld [smem:[#allocation4 + $0x2]]  ;;  %s548_s11 = sld [smem:[#allocation6 + $0x80]] }
  0x4e   : > { %v288_v10 = vadd.f32 %v287_v7, %v284_v4  ;;  %v305_v11 = vmul.f32 %v304_v9, %v277_v0  ;;  %v307_v12 = vstv %s536_s25  ;;  %s554_s12 = sld [smem:[#allocation6 + $0x100]]  ;;  %s545_s13 = sld [smem:[#allocation6 + $0x1]] }
  0x4f   : > { %v308_v14 = vmul.f32 %v530_v1, %v307_v12  ;;  %s549_s14 = sld [smem:[#allocation6 + $0x81]]  ;;  %s546_s16 = sld [smem:[#allocation6 + $0x2]] }
  0x50   : > { %v292_v15 = vadd.f32 %v291_v8, %v288_v10  ;;  %v311_v17 = vstv %s537_s29  ;;  %v315_v21 = vstv %s538_s30  ;;  %s555_s15 = sld [smem:[#allocation6 + $0x101]]  ;;  %s550_s17 = sld [smem:[#allocation6 + $0x82]] }
  0x51   : > { %v309_v16 = vadd.f32 %v308_v14, %v305_v11  ;;  %v312_v19 = vmul.f32 %v531_v3, %v311_v17  ;;  %v325_v20 = vstv %s540_s6  ;;  %v328_v23 = vstv %s541_s7  ;;  %s556_s19 = sld [smem:[#allocation6 + $0x102]]  ;;  %s853_s20 = sld [smem:[#allocation7]] }
  0x52   : > { %v295_v18 = vadd.f32 %v294_v13, %v292_v15  ;;  %v326_v22 = vmul.f32 %v325_v20, %v277_v0  ;;  %v332_v24 = vstv %s542_s8  ;;  %v329_v27 = vmul.f32 %v530_v1, %v328_v23  ;;  %s551_s21 = sld [smem:[#allocation7 + $0x1]]  ;;  %s557_s23 = sld [smem:[#allocation7 + $0x2]] }
  0x53   : > { %v313_v26 = vadd.f32 %v312_v19, %v309_v16  ;;  %v333_v28 = vmul.f32 %v531_v3, %v332_v24  ;;  %v336_v31 = vstv %s543_s9  ;;  %v346_v44 = vstv %s345_s10 }
  0x54   : > { %v534_v25 = vmul.f32 -1.442695, %v295_v18  ;;  %v330_v30 = vadd.f32 %v329_v27, %v326_v22  ;;  %v372_v45 = vstv %s548_s11  ;;  %v395_v46 = vstv %s554_s12 }
  0x55   : > { %v316_v29 = vadd.f32 %v315_v21, %v313_v26  ;;  %v349_v48 = vstv %s545_s13  ;;  %v375_v49 = vstv %s549_s14  ;;  %v353_v59 = vstv %s546_s16 }
  0x56   : > { %613 = vpow2.f32 %v534_v25  ;;  %v334_v33 = vadd.f32 %v333_v28, %v330_v30  ;;  %v398_v50 = vstv %s555_s15  ;;  %v379_v60 = vstv %s550_s17 }
  0x57   : > { %v539_v32 = vmul.f32 -1.442695, %v316_v29  ;;  %v402_v61 = vstv %s556_s19  ;;  %v357_v5 = vstv %s853_s20  ;;  %v366_v23 = vlaneseq }
  0x58   : > { %v337_v34 = vadd.f32 %v336_v31, %v334_v33  ;;  %v383_v6 = vstv %s551_s21  ;;  %v406_v7 = vstv %s557_s23 }
  0x59   : > { %615 = vpow2.f32 %v539_v32  ;;  %vm368_vm0 = vcmp.lt.s32.totalorder %v366_v23, 256 }
  0x5a   : > { %v544_v35 = vmul.f32 -1.442695, %v337_v34 }
  0x5c   : > { %617 = vpow2.f32 %v544_v35 }
  0x60   : > { %v614_v36 = vpop.eup %613 }
  0x61   : > { %v299_v37 = vadd.f32 1.0, %v614_v36 }
  0x63   : > { %619 = vrcp.f32 %v299_v37  ;;  %v616_v38 = vpop.eup %615 }
  0x64   : > { %v320_v39 = vadd.f32 1.0, %v616_v38 }
  0x66   : > { %621 = vrcp.f32 %v320_v39  ;;  %v618_v40 = vpop.eup %617 }
  0x67   : > { %v341_v41 = vadd.f32 1.0, %v618_v40 }
  0x69   : > { %623 = vrcp.f32 %v341_v41 }
  0x6d   : > { %v620_v42 = vpop.eup %619 }
  0x6e   : > { %v302_v43 = vmul.f32 %v620_v42, %v295_v18 }
  0x70   : > { %v622_v47 = vpop.eup %621  ;;  %v347_v52 = vmul.f32 %v346_v44, %v302_v43  ;;  %v373_v53 = vmul.f32 %v372_v45, %v302_v43  ;;  %v396_v54 = vmul.f32 %v395_v46, %v302_v43 }
  0x71   : > { %v323_v51 = vmul.f32 %v622_v47, %v316_v29 }
  0x73   : > { %v350_v55 = vmul.f32 %v349_v48, %v323_v51  ;;  %v376_v56 = vmul.f32 %v375_v49, %v323_v51  ;;  %v399_v57 = vmul.f32 %v398_v50, %v323_v51  ;;  %v624_v58 = vpop.eup %623 }
  0x74   : > { %v344_v62 = vmul.f32 %v624_v58, %v337_v34 }
  0x75   : > { %v351_v63 = vadd.f32 %v350_v55, %v347_v52  ;;  %v377_v0 = vadd.f32 %v376_v56, %v373_v53  ;;  %v400_v1 = vadd.f32 %v399_v57, %v396_v54 }
  0x76   : > { %v354_v2 = vmul.f32 %v353_v59, %v344_v62  ;;  %v380_v3 = vmul.f32 %v379_v60, %v344_v62  ;;  %v403_v4 = vmul.f32 %v402_v61, %v344_v62 }
  0x78   : > { %v355_v8 = vadd.f32 %v354_v2, %v351_v63  ;;  %v381_v9 = vadd.f32 %v380_v3, %v377_v0  ;;  %v404_v10 = vadd.f32 %v403_v4, %v400_v1 }
  0x7a   : > { %v358_v11 = vadd.f32 %v357_v5, %v355_v8  ;;  %v384_v12 = vadd.f32 %v383_v6, %v381_v9  ;;  %v407_v13 = vadd.f32 %v406_v7, %v404_v10 }
  0x7c   : > { %v547_v14 = vmul.f32 -1.442695, %v358_v11  ;;  %v552_v15 = vmul.f32 -1.442695, %v384_v12  ;;  %v558_v16 = vmul.f32 -1.442695, %v407_v13 }
  0x7e   : > { %625 = vpow2.f32 %v547_v14 }
  0x7f   : > { %627 = vpow2.f32 %v552_v15 }
  0x80   : > { %629 = vpow2.f32 %v558_v16 }
  0x88   : > { %v626_v17 = vpop.eup %625 }
  0x89   : > { %v628_v18 = vpop.eup %627  ;;  %v362_v19 = vadd.f32 1.0, %v626_v17 }
  0x8a   : > { %v630_v20 = vpop.eup %629  ;;  %v388_v21 = vadd.f32 1.0, %v628_v18 }
  0x8b   : > { %631 = vrcp.f32 %v362_v19  ;;  %v411_v22 = vadd.f32 1.0, %v630_v20 }
  0x8c   : > { %633 = vrcp.f32 %v388_v21 }
  0x8d   : > { %635 = vrcp.f32 %v411_v22 }
  0x95   : > { %v632_v24 = vpop.eup %631 }
  0x96   : > { %v634_v25 = vpop.eup %633  ;;  %v365_v26 = vmul.f32 %v632_v24, %v358_v11 }
  0x97   : > { %v636_v27 = vpop.eup %635  ;;  %v391_v28 = vmul.f32 %v634_v25, %v384_v12 }
  0x98   : > { %370 = vst.msk [vmem:[%s276_s27] ss:$4 sm:$0x3] %vm368_vm0, %v365_v26  ;;  %v414_v29 = vmul.f32 %v636_v27, %v407_v13 }
  0x99   : > { %553 = vst.msk [vmem:[%s276_s27 + $0x1] ss:$4 sm:$0x3] %vm368_vm0, %v391_v28 }
  0x9a   : > { %559 = vst.msk [vmem:[%s276_s27 + $0x2] ss:$4 sm:$0x3] %vm368_vm0, %v414_v29 }
  0x9b PF: > { %s18_s18 = sadd.s32 1, %s715_s18  }
  0x9c   : > { %p15_p2 = scmp.ge.s32.totalorder %s18_s18, 4  }
  0x9e   :  { %17 = sbr.rel (!%p15_p2) target bundleno = 3 (0x3), region = 91 }
  0xa5   :  { %438 = vsyncpa [#allocation3], 1 }
  0xa6   :  { %440 = vsyncpa [#allocation3 + $0x1], 1 }
  0xa7   :  { %441 = vsyncpa [#allocation5], 1 }
  0xa8   :  { %442 = vsyncpa [#allocation8], 1 }

</bundles_post_ra>
